<compile_context>
chip_gen: v7x
topology: tpu7x:2x2x1
jax: 0.10.0
libtpu: 0.0.40
codegen_flags: <defaults>
</compile_context>

<pallas_src>
import jax
import jax.numpy as jnp
from jax.experimental import pallas as pl
from jax.experimental.pallas import tpu as pltpu


def _round_up(x, m):
    return ((x + m - 1) // m) * m


def _vmem_capacity_bytes():
    """Physical per-core VMEM; conservative 64 MiB (v7x) if the query fails."""
    try:
        cap = int(pltpu.get_tpu_info().vmem_capacity_bytes)
        if cap > 0:
            return cap
    except Exception:
        pass
    return 64 << 20


def _cond_linear_kernel(x_ref, wt_ref, b_ref, y_ref, o_ref):
    # x_ref: (TB, K)   wt_ref: (K, TN)   b_ref: (1, TN)   y_ref/o_ref: (TB, TN)
    acc = jnp.dot(x_ref[...], wt_ref[...], preferred_element_type=jnp.float32)
    acc = acc + b_ref[...].astype(jnp.float32)            # row-broadcast bias
    o_ref[...] = (y_ref[...].astype(jnp.float32) * acc).astype(o_ref.dtype)


def prepare_cond_linear_params(w, b, *, dtype=None):
    """One-time parameter prep (call at init, NOT per forward).

    w: (num_out, num_in) in nn.Linear convention; b: (num_out,).
    Returns (wt, b2): wt is (num_in, num_out), transposed ONCE so the hot path
    never pays a per-call HBM transpose; b2 is (1, num_out) kept in f32 (tiny,
    read once -- storing it reduced-precision only loses accuracy).
    Pass dtype=jnp.bfloat16 to store the weights (and run the MXU) in bf16.
    """
    num_out, num_in = w.shape
    wt = jnp.asarray(w).T
    if dtype is not None:
        wt = wt.astype(dtype)
    b2 = jnp.asarray(b, dtype=jnp.float32).reshape(1, num_out)
    return wt, b2


def conditional_linear_apply(x, y, wt, b2, *,
                             block_b=None, block_n=None,
                             input_dtype=None, out_dtype=None,
                             min_pallas_elems=1 << 17):
    """Hot path: out = y * (x @ W^T + b) with W pre-transposed.

    input_dtype: optional reduced precision (e.g. jnp.bfloat16) for the
      streamed tensors.  x is always fed to the MXU in wt.dtype (operands match
      the stored param dtype), so input_dtype mainly controls the gate stream
      and -- unless out_dtype is given -- the output stream: the two HBM
      streams that set the roofline here.  Accumulation stays f32 in-kernel.
    """
    B, num_in = x.shape
    k, num_out = wt.shape
    assert k == num_in, (wt.shape, x.shape)
    assert y.shape == (B, num_out), (y.shape, (B, num_out))
    assert b2.shape == (1, num_out), b2.shape

    if input_dtype is not None:
        x = x.astype(input_dtype)
        y = y.astype(input_dtype)
    if x.dtype != wt.dtype:
        x = x.astype(wt.dtype)                 # MXU operands match param dtype
    if out_dtype is None:
        out_dtype = y.dtype                    # follows input_dtype when given
    out_dtype = jnp.dtype(out_dtype)

    # Tiny layers: pallas_call launch + per-step overhead would dominate; let
    # XLA fuse the whole thing instead.
    if B * num_out < min_pallas_elems:
        acc = jnp.dot(x, wt, preferred_element_type=jnp.float32) + b2
        return (y.astype(jnp.float32) * acc).astype(out_dtype)

    x_item = x.dtype.itemsize
    w_item = wt.dtype.itemsize
    y_item = y.dtype.itemsize
    o_item = out_dtype.itemsize

    # Sublane packing of the narrowest streamed dtype sets the row alignment.
    row_align = {4: 8, 2: 16, 1: 32}.get(min(x_item, y_item, o_item), 8)

    vmem_cap = _vmem_capacity_bytes()
    big_vmem = vmem_cap >= (96 << 20)          # v5e / v6e (128 MiB VMEM)
    cap_b = 1024 if big_vmem else 512
    cap_n = 2048 if big_vmem else 1024

    # ---- batch tiling ------------------------------------------------------
    if block_b is None:
        if B <= row_align:
            block_b = B                        # single full-dim row block
        else:
            # >=2 row blocks whenever B >= 2*row_align: DMA/compute overlap and
            # both v7x TensorCores get work on the leading parallel axis.
            block_b = min(cap_b, _round_up(pl.cdiv(B, 2), row_align))
    else:
        block_b = min(block_b, B)
        if block_b != B:
            block_b = max(row_align, (block_b // row_align) * row_align)

    # ---- feature tiling (no padding: full-dim block or 128-multiple tiles) --
    if block_n is None:
        block_n = num_out if num_out <= cap_n else cap_n
    else:
        block_n = min(block_n, num_out)
        if block_n < num_out:
            block_n = _round_up(block_n, 128)
            if block_n >= num_out:
                block_n = num_out

    # ---- VMEM budget (incl. f32 accumulator / elementwise temporaries) ------
    def vmem_est(bb, bn):
        return (2 * bb * num_in * x_item       # x            (double-buffered)
                + num_in * bn * w_item         # weights      (single-buffered)
                + bn * 4                       # f32 bias     (single-buffered)
                + 2 * bb * bn * y_item         # gate         (double-buffered)
                + 2 * bb * bn * o_item         # out          (double-buffered)
                + 2 * bb * bn * 4)             # f32 matmul acc + ewise temps

    budget = int(0.70 * vmem_cap)
    while vmem_est(block_b, block_n) > budget:
        if block_b >= 2 * row_align:
            block_b = max(row_align, (block_b // 2 // row_align) * row_align)
        elif block_n > 128:
            block_n = max(128, (block_n // 2 // 128) * 128)
        else:
            break

    grid_b = pl.cdiv(B, block_b)
    grid_n = pl.cdiv(num_out, block_n)

    # Cap well below physical VMEM (headroom for Mosaic internal scratch).
    vmem_limit = int(min(max(2 * vmem_est(block_b, block_n), 32 << 20),
                         int(0.85 * vmem_cap)))

    cost = pl.CostEstimate(
        flops=2 * B * num_in * num_out,
        transcendentals=0,
        bytes_accessed=int(B * num_in * x_item + num_in * num_out * w_item
                           + num_out * 4 + B * num_out * y_item
                           + B * num_out * o_item))

    # Weights / bias are tiny and their block index is constant along the fast
    # batch axis: single-buffering them costs ~nothing and frees VMEM for the
    # gate/output streams that actually set the roofline.
    wt_spec = pl.BlockSpec((num_in, block_n), lambda i, j: (0, j),
                           pipeline_mode=pl.Buffered(1))
    b_spec = pl.BlockSpec((1, block_n), lambda i, j: (0, j),
                          pipeline_mode=pl.Buffered(1))

    return pl.pallas_call(
        _cond_linear_kernel,
        out_shape=jax.ShapeDtypeStruct((B, num_out), out_dtype),
        grid_spec=pltpu.PrefetchScalarGridSpec(
            num_scalar_prefetch=0,
            grid=(grid_b, grid_n),             # batch leads -> megacore shard
            in_specs=[
                pl.BlockSpec((block_b, num_in), lambda i, j: (i, 0)),
                wt_spec,
                b_spec,
                pl.BlockSpec((block_b, block_n), lambda i, j: (i, j)),
            ],
            out_specs=pl.BlockSpec((block_b, block_n), lambda i, j: (i, j)),
        ),
        compiler_params=pltpu.CompilerParams(
            dimension_semantics=("parallel", "parallel"),
            vmem_limit_bytes=vmem_limit),
        cost_estimate=cost,
    )(x, wt, b2, y)


def conditional_linear(x, y, w, b, *, param_dtype=None, **kwargs):
    """Convenience one-shot call (prep done per call).  In a model, prefer
    prepare_cond_linear_params(...) once + conditional_linear_apply(...)."""
    wt, b2 = prepare_cond_linear_params(w, b, dtype=param_dtype)
    return conditional_linear_apply(x, y, wt, b2, **kwargs)


if __name__ == "__main__":
    # Small shapes consistent with the module's forward: x (B, num_in),
    # y (B, num_out).  B >= 16 so the leading batch grid axis has >=2 blocks.
    B, num_in, num_out = 64, 32, 64

    key = jax.random.PRNGKey(0)
    kx, ky, kw, kb = jax.random.split(key, 4)

    # Deterministic params (mimics nn.Linear uniform bound 1/sqrt(num_in)).
    bound = 1.0 / (num_in ** 0.5)
    w = jax.random.uniform(kw, (num_out, num_in), jnp.float32, -bound, bound)
    b = jax.random.uniform(kb, (num_out,), jnp.float32, -bound, bound)

    x = jax.random.normal(kx, (B, num_in), jnp.float32)
    y = jax.random.normal(ky, (B, num_out), jnp.float32)

    # One-time parameter prep (hoisted transpose), then the hot-path kernel.
    # min_pallas_elems=0 forces the Pallas path even at this demo-sized shape
    # (the default bypass would hand such tiny layers back to XLA fusion).
    wt, b2 = prepare_cond_linear_params(w, b)
    out = conditional_linear_apply(x, y, wt, b2, min_pallas_elems=0)
    out = jax.block_until_ready(out)

    # Pure-JAX reference check.
    ref = y * (x @ w.T + b)
    assert out.shape == (B, num_out), out.shape
    assert out.dtype == ref.dtype, (out.dtype, ref.dtype)
    assert jnp.allclose(out, ref, atol=1e-5, rtol=1e-5), "mismatch vs reference"

    print("KERNEL_OK")
</pallas_src>

<mosaic_0001>
module attributes {stable_mosaic.version = 11 : i64} {
  func.func @_cond_linear_kernel(%arg0: i32, %arg1: i32, %arg2: memref<32x32xf32, #tpu.memory_space<vmem>>, %arg3: memref<32x64xf32, #tpu.memory_space<vmem>>, %arg4: memref<1x64xf32, #tpu.memory_space<vmem>>, %arg5: memref<32x64xf32, #tpu.memory_space<vmem>>, %arg6: memref<32x64xf32, #tpu.memory_space<vmem>>) attributes {dimension_semantics = [#tpu.dimension_semantics<parallel>, #tpu.dimension_semantics<parallel>], iteration_bounds = array<i64: 2, 1>, scalar_prefetch = 0 : i64, scratch_operands = 0 : i64, tpu.core_type = #tpu.core_type<tc>, window_params = [{transform_indices = @transform_0, window_bounds = array<i64: 32, 32>}, {pipeline_mode = #tpu.pipeline_mode<synchronous>, transform_indices = @transform_1, window_bounds = array<i64: 32, 64>}, {pipeline_mode = #tpu.pipeline_mode<synchronous>, transform_indices = @transform_2, window_bounds = array<i64: 1, 64>}, {transform_indices = @transform_3, window_bounds = array<i64: 32, 64>}, {transform_indices = @transform_4, window_bounds = array<i64: 32, 64>}]} {
    %c0 = arith.constant 0 : index
    %c0_0 = arith.constant 0 : index
    %0 = vector.load %arg2[%c0, %c0_0] : memref<32x32xf32, #tpu.memory_space<vmem>>, vector<32x32xf32>
    %c0_1 = arith.constant 0 : index
    %c0_2 = arith.constant 0 : index
    %1 = vector.load %arg3[%c0_1, %c0_2] : memref<32x64xf32, #tpu.memory_space<vmem>>, vector<32x64xf32>
    %cst = arith.constant dense<0.000000e+00> : vector<32x64xf32>
    %2 = tpu.matmul %0, %1, %cst {dimension_numbers = #tpu.dot_dimension_numbers<[1], [0], [0], [1], [0, 0, 1, 1], [], []>} : vector<32x32xf32>, vector<32x64xf32>, vector<32x64xf32> -> vector<32x64xf32>
    %c0_3 = arith.constant 0 : index
    %c0_4 = arith.constant 0 : index
    %3 = vector.load %arg4[%c0_3, %c0_4] : memref<1x64xf32, #tpu.memory_space<vmem>>, vector<1x64xf32>
    %4 = vector.broadcast %3 : vector<1x64xf32> to vector<32x64xf32>
    %5 = arith.addf %2, %4 : vector<32x64xf32>
    %c0_5 = arith.constant 0 : index
    %c0_6 = arith.constant 0 : index
    %6 = vector.load %arg5[%c0_5, %c0_6] : memref<32x64xf32, #tpu.memory_space<vmem>>, vector<32x64xf32>
    %7 = arith.mulf %6, %5 : vector<32x64xf32>
    %c0_7 = arith.constant 0 : index
    %c0_8 = arith.constant 0 : index
    %8 = vector.load %arg6[%c0_7, %c0_8] : memref<32x64xf32, #tpu.memory_space<vmem>>, vector<32x64xf32>
    tpu.vector_store %arg6[%c0_7, %c0_8], %7 {strides = array<i32>} : memref<32x64xf32, #tpu.memory_space<vmem>>, vector<32x64xf32>,
    return
  }
  func.func @transform_0(%arg0: i32, %arg1: i32) -> (i32, i32) {
    %c0_i32 = arith.constant 0 : i32
    %c0_i32_0 = arith.constant 0 : i32
    return %arg0, %c0_i32 : i32, i32
  }
  func.func @transform_1(%arg0: i32, %arg1: i32) -> (i32, i32) {
    %c0_i32 = arith.constant 0 : i32
    %c0_i32_0 = arith.constant 0 : i32
    return %c0_i32, %arg1 : i32, i32
  }
  func.func @transform_2(%arg0: i32, %arg1: i32) -> (i32, i32) {
    %c0_i32 = arith.constant 0 : i32
    %c0_i32_0 = arith.constant 0 : i32
    return %c0_i32, %arg1 : i32, i32
  }
  func.func @transform_3(%arg0: i32, %arg1: i32) -> (i32, i32) {
    %c0_i32 = arith.constant 0 : i32
    return %arg0, %arg1 : i32, i32
  }
  func.func @transform_4(%arg0: i32, %arg1: i32) -> (i32, i32) {
    %c0_i32 = arith.constant 0 : i32
    return %arg0, %arg1 : i32, i32
  }
}

</mosaic_0001>

<bundles_post_ra>
// kernel: tpu_custom_call.1
= control target key start
LH: loop header
LB: loop body
LE: loop exit
PB: predicated region body
PF: predicated region fallthrough
CT: control target
= control target key end

     0   :  { %9 = vsyncpa [#allocation3], 0  ;;  %s890_s0 = inlined_call_operand.vmem [shape: f32[64,32], index: 0, kind: input, shape index: {}]   ;;  %s891_s1 = inlined_call_operand.vmem [shape: f32[32,64], index: 1, kind: input, shape index: {}]   ;;  %s892_s2 = inlined_call_operand.vmem [shape: f32[1,64], index: 2, kind: input, shape index: {}]   ;;  %s893_s3 = inlined_call_operand.vmem [shape: f32[64,64], index: 3, kind: input, shape index: {}]   ;;  %s894_s4 = inlined_call_operand.hbm [shape: f32[64,64], index: 4, kind: output, shape index: {}]  }
   0x1   :  { %11 = vsyncpa [#allocation3 + $0x1], 0  ;;  %s754_s15 = smov 0   ;;  %s756_s16 = smov 0  }
   0x2   :  { %s758_s17 = smov 0   ;;  %s760_s18 = smov 0  }
   0x3   :  { %s762_s19 = smov 0   ;;  %s764_s20 = smov 0  }
   0x4 LB: > { %s532_s21 = sadd.s32 4294967295, %s724_s20   ;;  %s533_s22 = sadd.s32 4294967294, %s724_s20   ;;  %s724_s20 = sphi %s764_s20, %s17_s20   ;;  %s720_s19 = sphi %s762_s19, %s901_s19   ;;  %s716_s18 = sphi %s760_s18, %s900_s18   ;;  %s712_s17 = sphi %s758_s17, %s899_s17   ;;  %s708_s16 = sphi %s756_s16, %s898_s16   ;;  %s704_s15 = sphi %s754_s15, %s897_s15  }
   0x5   : > { %s29_s23 = sadd.s32 1, %s720_s19  ;;  %s144_s24 = sadd.s32 1, %s712_s17 }
   0x6   : > { %p31_p0 = scmp.ge.s32.totalorder %s29_s23, 2  ;;  %p154_p1 = scmp.ne.s32.totalorder %s712_s17, %s708_s16 }
   0x7   : > { %p155_p2 = scmp.eq.s32.totalorder %s532_s21, 1  ;;  %p160_p3 = scmp.ne.s32.totalorder %s708_s16, %s704_s15 }
   0x8   : > { %s903_s23 = smov (%p31_p0, %s29_s23), 0  ;;  %p161_p5 = scmp.eq.s32.totalorder %s533_s22, 1 }
   0x9   : > { %p794_p4 = por %p155_p2, %p154_p1  ;;  %s139_s26 = ssub.s32 %s720_s19, %s903_s23 }
   0xa   : > { %p538_p6 = scmp.ge.s32.totalorder %s724_s20, 1  ;;  %p142_p7 = scmp.eq.s32.totalorder %s139_s26, 0 }
   0xb   : > { %p801_p8 = por %p161_p5, %p160_p3  ;;  %p213_p9 = scmp.lt.s32.totalorder %s724_s20, 3 }
   0xc   : > { %s807_s28 = scalar_select %p142_p7, %s712_s17, %s144_s24  }
   0xd   : > { %p214_p10 = pnand %p538_p6, %p213_p9 }
   0xe   : > { %v281_v0 = vld [vmem:[%s891_s1] sm:$0xff] (!%p214_p10)  ;;  %v282_v1 = vld [vmem:[%s891_s1 + $0x8] sm:$0xff] (!%p214_p10)  ;;  %v283_v2 = vld [vmem:[%s891_s1 + $0x10] sm:$0xff] (!%p214_p10)  ;;  %s540_s9 = sshll.u32 (!%p214_p10), %s716_s18, 2  ;;  %vm292_vm0 = vcmask (!%p214_p10), 261120   ;;  %s251_s22 = sand.u32 (!%p214_p10), 1, %s708_s16  }
   0xf   : > { %217 = sbr.rel (%p214_p10) target bundleno = 259 (0x103), region = 36  ;;  %v577_v3 = vpack.c.bf16 (!%p214_p10), %v282_v1, %v281_v0  ;;  %v284_v4 = vld [vmem:[%s891_s1 + $0x18] sm:$0xff] (!%p214_p10)  ;;  %p255_p11 = scmp.lt.s32.totalorder (!%p214_p10), %s540_s9, 7  ;;  %v544_v10 = vld [vmem:[%s892_s2] ss:$0 sm:$0xff] (!%p214_p10)  ;;  %vm398_vm1 = vcmask (!%p214_p10), 523264  }
  0x10   : > { %v581_v5 = vpack.c.bf16 (!%p214_p10), %v284_v4, %v283_v2  ;;  %s539_s24 = sshll.u32 (!%p214_p10), %s251_s22, 5  ;;  %s726_s14 = smov (!%p214_p10), [#allocation2]  }
  0x11   : > { %578 = vmatprep.subr.bf16.mxu0 (!%p214_p10), %v577_v3  ;;  %585 = vmatprep.subr.bf16.mxu1 (!%p214_p10), %v577_v3  ;;  %s253_s7 = scalar_lea.vmem (!%p214_p10), [#allocation2], %s539_s24 }
  0x12   : > { %580 = vmatpush3.bf16.msra.mxu0 (!%p214_p10), %v577_v3  ;;  %587 = vmatpush3.bf16.msra.mxu1 (!%p214_p10), %v577_v3  ;;  %s418_s8 = sshll.u32 (!%p214_p10), %s253_s7, 4  ;;  %s840_s8 = int_to_ptr.vmem [resolvable:$true] %s418_s8 }
  0x13   : > { %582 = vmatprep.subr.bf16.mxu0 (!%p214_p10), %v581_v5  ;;  %586 = vmatprep.subr.bf16.mxu1 (!%p214_p10), %v581_v5  ;;  %s646_s13 = scalar_lea.vmem (!%p214_p10), %s840_s8, 512 }
  0x14   : > { %p647_p12 = scmp.ne.s32.totalorder (!%p214_p10), %s840_s8, %s646_s13 }
  0x16   : > { %s905_s9 = smov (!%p255_p11, %s540_s9), 7  ;;  %584 = vmatpush3.bf16.msra.mxu0 %v581_v5  ;;  %588 = vmatpush3.bf16.msra.mxu1 %v581_v5  ;;  %p648_p13 = pnand %p647_p12, %p794_p4 }
  0x17   : > { %s541_s12 = sshll.u32 %s905_s9, 3  ;;  %s554_s9 = sshll.u32 %s716_s18, 9 }
  0x18   : > { %s258_s21 = scalar_lea.vmem %s890_s0, %s541_s12  ;;  %s274_s30 = scalar_lea.vmem %s893_s3, %s541_s12 }
  0x19   : > { %v277_v6 = vld [vmem:[%s258_s21] sm:$0xff]  ;;  %v279_v7 = vld [vmem:[%s258_s21 + $0x10] sm:$0xff]  ;;  %v278_v8 = vld [vmem:[%s258_s21 + $0x8] sm:$0xff]  ;;  %s838_s12 = scalar_lea.hbm %s894_s4, %s554_s9  ;;  %s844_s18 = scalar_lea.sflag [#allocation3], %s251_s22 }
  0x1a   : > { %v280_v9 = vld [vmem:[%s258_s21 + $0x18] sm:$0xff]  ;;  %571 = vmatprep.mubr.msk.f32.mxu0 %vm292_vm0, %v277_v6  ;;  %574 = vmatprep.mubr.msk.f32.mxu1 %vm292_vm0, %v279_v7  ;;  %v391_v12 = vld [vmem:[%s274_s30 + $0x8] sm:$0xff]  ;;  %v390_v18 = vld [vmem:[%s274_s30] sm:$0xff]  ;;  %p649_p0 = pneg %p648_p13  ;;  %s650_s21 = sshll.u32 %s726_s14, 4  ;;  %s651_s21 = int_to_ptr.vmem [resolvable:$false] %s650_s21 }
  0x1b   : > { %572 = vmatmul.mubr.msk.f32.vlgmr.msra.gmra.mrb[0].mxu0 %vm292_vm0, %v278_v8  ;;  %575 = vmatmul.mubr.msk.f32.vlgmr.msra.gmra.mrb[0].mxu1 %vm292_vm0, %v280_v9  ;;  %v393_v14 = vld [vmem:[%s274_s30 + $0x18] sm:$0xff]  ;;  %v392_v20 = vld [vmem:[%s274_s30 + $0x10] sm:$0xff]  ;;  %s652_s24 = scalar_lea.vmem %s651_s21, 1024  ;;  %p653_p1 = scmp.lt.s32.totalorder %s840_s8, %s651_s21 }
  0x1c   : > { %p654_p2 = scmp.lt.s32.totalorder %s652_s24, %s646_s13 }
  0x1e   : > { %p655_p3 = por %p654_p2, %p653_p1 }
  0x20   : > { %p656_p5 = pnand %p655_p3, %p649_p0 }
  0xee   : > { %v573_v11 = vpop.f32.mrb[0].mxu0  ;;  %v576_v13 = vpop.f32.mrb[0].mxu1 }
  0xef   : > { %v377_v15 = vadd.f32 %v573_v11, %v544_v10  ;;  %v387_v16 = vadd.f32 %v576_v13, %v544_v10  ;;  %v371_v17 = vpop.f32.mrb[1].mxu0  ;;  %v381_v19 = vpop.f32.mrb[1].mxu1 }
  0xf0   : > { %v372_v21 = vadd.f32 %v544_v10, %v371_v17  ;;  %v382_v22 = vadd.f32 %v544_v10, %v381_v19 }
  0xf1   : > { %v395_v23 = vmul.f32 %v391_v12, %v377_v15  ;;  %v397_v24 = vmul.f32 %v393_v14, %v387_v16 }
  0xf2   : > { %v394_v25 = vmul.f32 %v390_v18, %v372_v21  ;;  %v396_v26 = vmul.f32 %v392_v20, %v382_v22 }
  0xf3   : > { %400 = vst.msk [vmem:[%s253_s7 + $0x8] sm:$0xff] %vm398_vm1, %v395_v23  ;;  %402 = vst.msk [vmem:[%s253_s7 + $0x18] sm:$0xff] %vm398_vm1, %v397_v24 }
  0xf4   : > { %399 = vst.msk [vmem:[%s253_s7] sm:$0xff] %vm398_vm1, %v394_v25  ;;  %401 = vst.msk [vmem:[%s253_s7 + $0x10] sm:$0xff] %vm398_vm1, %v396_v26 }
  0xf5   : > { %659 = shalt.err (!%p656_p5)
}
  0xf6   : > { %s660_s22 = scalar_lea.hbm %s838_s12, 512  ;;  %s664_s30 = scalar_lea.hbm %s894_s4, 1024 }
  0xf7   : > { %p661_p6 = scmp.ne.s32.totalorder %s838_s12, %s660_s22  ;;  %p665_p10 = scmp.lt.u32.totalorder %s838_s12, %s894_s4 }
  0xf8   : > { %p666_p11 = scmp.lt.u32.totalorder %s664_s30, %s660_s22  ;;  %p668_p13 = scmp.lt.u32.totalorder %s660_s22, %s838_s12 }
  0xf9   : > { %p662_p7 = pnand %p661_p6, %p794_p4 }
  0xfa   : > { %p667_p12 = por %p666_p11, %p665_p10 }
  0xfb   : > { %p663_p9 = pneg %p662_p7 }
  0xfc   : > { %p669_p0 = por %p668_p13, %p667_p12 }
  0xfe   : > { %p670_p1 = pnand %p669_p0, %p663_p9 }
 0x100   : > { %673 = shalt.err (!%p670_p1)
}
 0x101   : > { %s727_s7 = smov 128   ;;  %s728_s9 = smov 8  }
 0x102   : > { %589 = dma.vmem_to_hbm [thread:$0]  (%p794_p4), %s840_s8, 512, %s838_s12, %s844_s18, %s727_s7, %s727_s7, %s728_s9  }
 0x103 PF: > { %p595_p2 = scmp.ge.s32.totalorder %s724_s20, 2  ;;  %s433_s10 = sand.u32 1, %s704_s15  }
 0x104   : > { %s434_s11 = scalar_lea.sflag [#allocation3], %s433_s10 }
 0x105   : > { %p592_p3 = pnand %p595_p2, %p801_p8 }
 0x107   : > { %699 = dma.done.wait (!%p592_p3), %s434_s11, 512  }
 0x108   : > { %701 = vsyncadd (!%p592_p3), %s434_s11, 4294966784  ;;  %s17_s20 = sadd.s32 1, %s724_s20   ;;  %s897_s15 = smov %s708_s16 }
 0x109   : > { %p14_p5 = scmp.ge.s32.totalorder %s17_s20, 4   ;;  %s898_s16 = smov %s712_s17 }
 0x10a   : > { %s899_s17 = smov %s807_s28  ;;  %s900_s18 = smov %s720_s19 }
 0x10b   : > { %s901_s19 = smov %s903_s23  ;;  %16 = sbr.rel (!%p14_p5) target bundleno = 4 (0x4), region = 80 }
 0x112   :  { %439 = vsyncpa [#allocation3], 1 }
 0x113   :  { %441 = vsyncpa [#allocation3 + $0x1], 1 }

</bundles_post_ra>
